<compile_context>
chip_gen: v5e
topology: v5e:2x2
jax: 0.10.0
libtpu: 0.0.40
codegen_flags: <defaults>
</compile_context>

<pallas_src>
import jax
import jax.numpy as jnp
from jax.experimental import pallas as pl
from jax.experimental.pallas import tpu as pltpu


def _round_up(x, m):
    return (x + m - 1) // m * m


def pack_conv1d_banks_params(weights, conv_biases, gammas, betas,
                             running_means, running_vars, eps=1e-5):
    """Fold K Conv1d weights/biases + BatchNorm1d params into packed tensors.

    weights[k-1]: [C_out, C_in, k] (PyTorch Conv1d layout). Call once at init.
    Returns (w_big [K, C_in, K*C_out], scale [1, K*C_out], shift [1, K*C_out]).
    """
    K = len(weights)
    C_out, C_in, _ = weights[0].shape
    left_max = K // 2
    w_big = jnp.zeros((K, C_in, K * C_out), dtype=weights[0].dtype)
    scales, shifts = [], []
    for k_idx in range(K):
        k = k_idx + 1
        w = weights[k_idx]                     # [C_out, C_in, k]
        left = k // 2                          # PyTorch "same"-style left pad
        for j in range(k):
            d = left_max - left + j
            w_big = w_big.at[d, :, k_idx * C_out:(k_idx + 1) * C_out].set(
                jnp.transpose(w[:, :, j]))     # [C_in, C_out]
        inv_std = gammas[k_idx] * jax.lax.rsqrt(running_vars[k_idx] + eps)
        scales.append(inv_std)
        shifts.append(betas[k_idx]
                      + (conv_biases[k_idx] - running_means[k_idx]) * inv_std)
    scale = jnp.concatenate(scales).reshape(1, K * C_out)
    shift = jnp.concatenate(shifts).reshape(1, K * C_out)
    return w_big, scale, shift


def conv1d_banks_forward(x, w_big, scale, shift, *, tile_t=None,
                         apply_relu=True):
    """x: [B, C_in, L]. Returns [B, K*C_out, L] (PyTorch channel order)."""
    B, C_in, L = x.shape
    K, c_in_w, KC = w_big.shape
    assert c_in_w == C_in
    left_max = K // 2
    right_max = (K - 1) // 2

    if tile_t is None:
        tile_t = min(512, _round_up(L, 8))
    tile_t = max(8, (tile_t // 8) * 8)
    L_round = _round_up(L, tile_t)

    # Channels-last + zero pad along time: [left_max | data | right pad].
    x_t = jnp.transpose(x, (0, 2, 1))                     # [B, L, C_in]
    L_pad = _round_up(left_max + L_round + right_max, 8)
    pad_right = L_pad - left_max - L
    x_pad = jnp.pad(x_t, ((0, 0), (left_max, pad_right), (0, 0)))

    grid = (B, L_round // tile_t)

    def kernel(x_ref, w_ref, scale_ref, shift_ref, o_ref):
        # x_ref : [L_pad, C_in]   padded time of current batch (VMEM resident)
        # w_ref : [K, C_in, K*C_out]  packed bank weights (VMEM resident)
        # scale_ref / shift_ref : [1, K*C_out]  folded BN + conv bias
        # o_ref : [tile_t, K*C_out]  lane-dense concatenated output tile
        t0 = pl.multiple_of(pl.program_id(1) * tile_t, tile_t)
        acc = jnp.zeros((tile_t, KC), jnp.float32)
        for d in range(K):                     # static unroll: K MXU pushes
            xs = x_ref[pl.ds(t0 + d, tile_t), :]
            acc = acc + jnp.dot(xs, w_ref[d],
                                preferred_element_type=jnp.float32)
        y = acc * scale_ref[...] + shift_ref[...]
        if apply_relu:
            y = jnp.maximum(y, 0.0)
        o_ref[...] = y.astype(o_ref.dtype)

    flops = 2 * B * L_round * C_in * KC * K + 3 * B * L_round * KC
    bytes_accessed = (x_pad.size * x_pad.dtype.itemsize
                      + w_big.size * w_big.dtype.itemsize
                      + scale.size * scale.dtype.itemsize
                      + shift.size * shift.dtype.itemsize
                      + B * L_round * KC * x.dtype.itemsize)

    out = pl.pallas_call(
        kernel,
        out_shape=jax.ShapeDtypeStruct((B, L_round, KC), x.dtype),
        grid_spec=pltpu.PrefetchScalarGridSpec(
            num_scalar_prefetch=0,
            grid=grid,
            in_specs=[
                pl.BlockSpec((None, L_pad, C_in), lambda b, t: (b, 0, 0)),
                pl.BlockSpec((K, C_in, KC), lambda b, t: (0, 0, 0)),
                pl.BlockSpec((1, KC), lambda b, t: (0, 0)),
                pl.BlockSpec((1, KC), lambda b, t: (0, 0)),
            ],
            out_specs=pl.BlockSpec((None, tile_t, KC), lambda b, t: (b, t, 0)),
        ),
        compiler_params=pltpu.CompilerParams(
            dimension_semantics=("parallel", "parallel"),
            vmem_limit_bytes=32 * 1024 * 1024,
        ),
        cost_estimate=pl.CostEstimate(flops=flops, transcendentals=0,
                                      bytes_accessed=bytes_accessed),
    )(x_pad, w_big, scale, shift)

    out = out[:, :L, :]                        # drop time rounding
    return jnp.transpose(out, (0, 2, 1))       # [B, K*C_out, L]


def _reference(x, weights, conv_biases, gammas, betas, means, variances,
               eps=1e-5):
    """Pure-JAX re-implementation of the PyTorch Conv1dBanks forward."""
    outs = []
    for k_idx, w in enumerate(weights):
        k = k_idx + 1
        pad = (k - 1) // 2 if k % 2 != 0 else (k + 1) // 2
        y = jax.lax.conv_general_dilated(
            x, w, window_strides=(1,), padding=[(pad, pad)],
            dimension_numbers=("NCH", "OIH", "NCH"))
        y = y + conv_biases[k_idx][None, :, None]
        if k % 2 == 0:
            y = y[:, :, :-1]
        inv = gammas[k_idx] / jnp.sqrt(variances[k_idx] + eps)
        y = (y - means[k_idx][None, :, None]) * inv[None, :, None] \
            + betas[k_idx][None, :, None]
        y = jnp.maximum(y, 0.0)                # activation = ReLU
        outs.append(y)
    return jnp.concatenate(outs, axis=1)


if __name__ == "__main__":
    # Small shapes consistent with the module: inputs [B, in_dims, L].
    B, C_in, L = 2, 16, 64
    C_out, K = 16, 8          # K * C_out = 128 -> lane-dense concat output
    dtype = jnp.float32

    key = jax.random.PRNGKey(0)
    kx, key = jax.random.split(key)
    x = jax.random.normal(kx, (B, C_in, L), dtype=dtype)

    weights, conv_biases, gammas, betas, means, variances = [], [], [], [], [], []
    for k in range(1, K + 1):
        key, kw, kb, kg, kbe, km, kv = jax.random.split(key, 7)
        weights.append(jax.random.normal(kw, (C_out, C_in, k), dtype=dtype) * 0.1)
        conv_biases.append(jax.random.normal(kb, (C_out,), dtype=dtype) * 0.1)
        gammas.append(1.0 + 0.1 * jax.random.normal(kg, (C_out,), dtype=dtype))
        betas.append(0.1 * jax.random.normal(kbe, (C_out,), dtype=dtype))
        means.append(0.1 * jax.random.normal(km, (C_out,), dtype=dtype))
        variances.append(0.5 + jnp.abs(jax.random.normal(kv, (C_out,), dtype=dtype)))

    # One-time parameter packing (init time, not per forward call).
    w_big, scale, shift = pack_conv1d_banks_params(
        weights, conv_biases, gammas, betas, means, variances)

    y = conv1d_banks_forward(x, w_big, scale, shift, tile_t=32)
    y = jax.block_until_ready(y)

    y_ref = _reference(x, weights, conv_biases, gammas, betas, means, variances)
    assert y.shape == (B, K * C_out, L), y.shape
    assert jnp.allclose(y, y_ref, atol=1e-4, rtol=1e-4), \
        float(jnp.max(jnp.abs(y - y_ref)))

    print("KERNEL_OK")
</pallas_src>

<mosaic_0001>
module attributes {stable_mosaic.version = 11 : i64} {
  func.func @kernel(%arg0: i32, %arg1: i32, %arg2: memref<1x72x16xf32, #tpu.memory_space<vmem>>, %arg3: memref<8x16x128xf32, #tpu.memory_space<vmem>>, %arg4: memref<1x128xf32, #tpu.memory_space<vmem>>, %arg5: memref<1x128xf32, #tpu.memory_space<vmem>>, %arg6: memref<1x32x128xf32, #tpu.memory_space<vmem>>) attributes {dimension_semantics = [#tpu.dimension_semantics<parallel>, #tpu.dimension_semantics<parallel>], iteration_bounds = array<i64: 2, 2>, scalar_prefetch = 0 : i64, scratch_operands = 0 : i64, tpu.core_type = #tpu.core_type<tc>, window_params = [{transform_indices = @transform_0, window_bounds = array<i64: 1, 72, 16>}, {pipeline_mode = #tpu.pipeline_mode<synchronous>, transform_indices = @transform_1, window_bounds = array<i64: 8, 16, 128>}, {pipeline_mode = #tpu.pipeline_mode<synchronous>, transform_indices = @transform_2, window_bounds = array<i64: 1, 128>}, {pipeline_mode = #tpu.pipeline_mode<synchronous>, transform_indices = @transform_3, window_bounds = array<i64: 1, 128>}, {transform_indices = @transform_4, window_bounds = array<i64: 1, 32, 128>}]} {
    %c32_i32 = arith.constant 32 : i32
    %0 = arith.muli %arg1, %c32_i32 : i32
    %1 = tpu.assume_multiple %0, 32 : i32
    %cst = arith.constant 0.000000e+00 : f32
    %2 = vector.broadcast %cst : f32 to vector<32x128xf32>
    %c0_i32 = arith.constant 0 : i32
    %3 = arith.addi %1, %c0_i32 : i32
    %c0 = arith.constant 0 : index
    %4 = arith.index_cast %3 : i32 to index
    %c0_0 = arith.constant 0 : index
    %5 = vector.load %arg2[%c0, %4, %c0_0] : memref<1x72x16xf32, #tpu.memory_space<vmem>>, vector<1x32x16xf32>
    %6 = vector.shape_cast %5 : vector<1x32x16xf32> to vector<32x16xf32>
    %c0_1 = arith.constant 0 : index
    %c0_2 = arith.constant 0 : index
    %c0_3 = arith.constant 0 : index
    %7 = vector.load %arg3[%c0_1, %c0_2, %c0_3] : memref<8x16x128xf32, #tpu.memory_space<vmem>>, vector<1x16x128xf32>
    %8 = vector.shape_cast %7 : vector<1x16x128xf32> to vector<16x128xf32>
    %cst_4 = arith.constant dense<0.000000e+00> : vector<32x128xf32>
    %9 = tpu.matmul %6, %8, %cst_4 {dimension_numbers = #tpu.dot_dimension_numbers<[1], [0], [0], [1], [0, 0, 1, 1], [], []>} : vector<32x16xf32>, vector<16x128xf32>, vector<32x128xf32> -> vector<32x128xf32>
    %10 = arith.addf %2, %9 : vector<32x128xf32>
    %c1_i32 = arith.constant 1 : i32
    %11 = arith.addi %1, %c1_i32 : i32
    %c0_5 = arith.constant 0 : index
    %12 = arith.index_cast %11 : i32 to index
    %c0_6 = arith.constant 0 : index
    %13 = vector.load %arg2[%c0_5, %12, %c0_6] : memref<1x72x16xf32, #tpu.memory_space<vmem>>, vector<1x32x16xf32>
    %14 = vector.shape_cast %13 : vector<1x32x16xf32> to vector<32x16xf32>
    %c1 = arith.constant 1 : index
    %c0_7 = arith.constant 0 : index
    %c0_8 = arith.constant 0 : index
    %15 = vector.load %arg3[%c1, %c0_7, %c0_8] : memref<8x16x128xf32, #tpu.memory_space<vmem>>, vector<1x16x128xf32>
    %16 = vector.shape_cast %15 : vector<1x16x128xf32> to vector<16x128xf32>
    %cst_9 = arith.constant dense<0.000000e+00> : vector<32x128xf32>
    %17 = tpu.matmul %14, %16, %cst_9 {dimension_numbers = #tpu.dot_dimension_numbers<[1], [0], [0], [1], [0, 0, 1, 1], [], []>} : vector<32x16xf32>, vector<16x128xf32>, vector<32x128xf32> -> vector<32x128xf32>
    %18 = arith.addf %10, %17 : vector<32x128xf32>
    %c2_i32 = arith.constant 2 : i32
    %19 = arith.addi %1, %c2_i32 : i32
    %c0_10 = arith.constant 0 : index
    %20 = arith.index_cast %19 : i32 to index
    %c0_11 = arith.constant 0 : index
    %21 = vector.load %arg2[%c0_10, %20, %c0_11] : memref<1x72x16xf32, #tpu.memory_space<vmem>>, vector<1x32x16xf32>
    %22 = vector.shape_cast %21 : vector<1x32x16xf32> to vector<32x16xf32>
    %c2 = arith.constant 2 : index
    %c0_12 = arith.constant 0 : index
    %c0_13 = arith.constant 0 : index
    %23 = vector.load %arg3[%c2, %c0_12, %c0_13] : memref<8x16x128xf32, #tpu.memory_space<vmem>>, vector<1x16x128xf32>
    %24 = vector.shape_cast %23 : vector<1x16x128xf32> to vector<16x128xf32>
    %cst_14 = arith.constant dense<0.000000e+00> : vector<32x128xf32>
    %25 = tpu.matmul %22, %24, %cst_14 {dimension_numbers = #tpu.dot_dimension_numbers<[1], [0], [0], [1], [0, 0, 1, 1], [], []>} : vector<32x16xf32>, vector<16x128xf32>, vector<32x128xf32> -> vector<32x128xf32>
    %26 = arith.addf %18, %25 : vector<32x128xf32>
    %c3_i32 = arith.constant 3 : i32
    %27 = arith.addi %1, %c3_i32 : i32
    %c0_15 = arith.constant 0 : index
    %28 = arith.index_cast %27 : i32 to index
    %c0_16 = arith.constant 0 : index
    %29 = vector.load %arg2[%c0_15, %28, %c0_16] : memref<1x72x16xf32, #tpu.memory_space<vmem>>, vector<1x32x16xf32>
    %30 = vector.shape_cast %29 : vector<1x32x16xf32> to vector<32x16xf32>
    %c3 = arith.constant 3 : index
    %c0_17 = arith.constant 0 : index
    %c0_18 = arith.constant 0 : index
    %31 = vector.load %arg3[%c3, %c0_17, %c0_18] : memref<8x16x128xf32, #tpu.memory_space<vmem>>, vector<1x16x128xf32>
    %32 = vector.shape_cast %31 : vector<1x16x128xf32> to vector<16x128xf32>
    %cst_19 = arith.constant dense<0.000000e+00> : vector<32x128xf32>
    %33 = tpu.matmul %30, %32, %cst_19 {dimension_numbers = #tpu.dot_dimension_numbers<[1], [0], [0], [1], [0, 0, 1, 1], [], []>} : vector<32x16xf32>, vector<16x128xf32>, vector<32x128xf32> -> vector<32x128xf32>
    %34 = arith.addf %26, %33 : vector<32x128xf32>
    %c4_i32 = arith.constant 4 : i32
    %35 = arith.addi %1, %c4_i32 : i32
    %c0_20 = arith.constant 0 : index
    %36 = arith.index_cast %35 : i32 to index
    %c0_21 = arith.constant 0 : index
    %37 = vector.load %arg2[%c0_20, %36, %c0_21] : memref<1x72x16xf32, #tpu.memory_space<vmem>>, vector<1x32x16xf32>
    %38 = vector.shape_cast %37 : vector<1x32x16xf32> to vector<32x16xf32>
    %c4 = arith.constant 4 : index
    %c0_22 = arith.constant 0 : index
    %c0_23 = arith.constant 0 : index
    %39 = vector.load %arg3[%c4, %c0_22, %c0_23] : memref<8x16x128xf32, #tpu.memory_space<vmem>>, vector<1x16x128xf32>
    %40 = vector.shape_cast %39 : vector<1x16x128xf32> to vector<16x128xf32>
    %cst_24 = arith.constant dense<0.000000e+00> : vector<32x128xf32>
    %41 = tpu.matmul %38, %40, %cst_24 {dimension_numbers = #tpu.dot_dimension_numbers<[1], [0], [0], [1], [0, 0, 1, 1], [], []>} : vector<32x16xf32>, vector<16x128xf32>, vector<32x128xf32> -> vector<32x128xf32>
    %42 = arith.addf %34, %41 : vector<32x128xf32>
    %c5_i32 = arith.constant 5 : i32
    %43 = arith.addi %1, %c5_i32 : i32
    %c0_25 = arith.constant 0 : index
    %44 = arith.index_cast %43 : i32 to index
    %c0_26 = arith.constant 0 : index
    %45 = vector.load %arg2[%c0_25, %44, %c0_26] : memref<1x72x16xf32, #tpu.memory_space<vmem>>, vector<1x32x16xf32>
    %46 = vector.shape_cast %45 : vector<1x32x16xf32> to vector<32x16xf32>
    %c5 = arith.constant 5 : index
    %c0_27 = arith.constant 0 : index
    %c0_28 = arith.constant 0 : index
    %47 = vector.load %arg3[%c5, %c0_27, %c0_28] : memref<8x16x128xf32, #tpu.memory_space<vmem>>, vector<1x16x128xf32>
    %48 = vector.shape_cast %47 : vector<1x16x128xf32> to vector<16x128xf32>
    %cst_29 = arith.constant dense<0.000000e+00> : vector<32x128xf32>
    %49 = tpu.matmul %46, %48, %cst_29 {dimension_numbers = #tpu.dot_dimension_numbers<[1], [0], [0], [1], [0, 0, 1, 1], [], []>} : vector<32x16xf32>, vector<16x128xf32>, vector<32x128xf32> -> vector<32x128xf32>
    %50 = arith.addf %42, %49 : vector<32x128xf32>
    %c6_i32 = arith.constant 6 : i32
    %51 = arith.addi %1, %c6_i32 : i32
    %c0_30 = arith.constant 0 : index
    %52 = arith.index_cast %51 : i32 to index
    %c0_31 = arith.constant 0 : index
    %53 = vector.load %arg2[%c0_30, %52, %c0_31] : memref<1x72x16xf32, #tpu.memory_space<vmem>>, vector<1x32x16xf32>
    %54 = vector.shape_cast %53 : vector<1x32x16xf32> to vector<32x16xf32>
    %c6 = arith.constant 6 : index
    %c0_32 = arith.constant 0 : index
    %c0_33 = arith.constant 0 : index
    %55 = vector.load %arg3[%c6, %c0_32, %c0_33] : memref<8x16x128xf32, #tpu.memory_space<vmem>>, vector<1x16x128xf32>
    %56 = vector.shape_cast %55 : vector<1x16x128xf32> to vector<16x128xf32>
    %cst_34 = arith.constant dense<0.000000e+00> : vector<32x128xf32>
    %57 = tpu.matmul %54, %56, %cst_34 {dimension_numbers = #tpu.dot_dimension_numbers<[1], [0], [0], [1], [0, 0, 1, 1], [], []>} : vector<32x16xf32>, vector<16x128xf32>, vector<32x128xf32> -> vector<32x128xf32>
    %58 = arith.addf %50, %57 : vector<32x128xf32>
    %c7_i32 = arith.constant 7 : i32
    %59 = arith.addi %1, %c7_i32 : i32
    %c0_35 = arith.constant 0 : index
    %60 = arith.index_cast %59 : i32 to index
    %c0_36 = arith.constant 0 : index
    %61 = vector.load %arg2[%c0_35, %60, %c0_36] : memref<1x72x16xf32, #tpu.memory_space<vmem>>, vector<1x32x16xf32>
    %62 = vector.shape_cast %61 : vector<1x32x16xf32> to vector<32x16xf32>
    %c7 = arith.constant 7 : index
    %c0_37 = arith.constant 0 : index
    %c0_38 = arith.constant 0 : index
    %63 = vector.load %arg3[%c7, %c0_37, %c0_38] : memref<8x16x128xf32, #tpu.memory_space<vmem>>, vector<1x16x128xf32>
    %64 = vector.shape_cast %63 : vector<1x16x128xf32> to vector<16x128xf32>
    %cst_39 = arith.constant dense<0.000000e+00> : vector<32x128xf32>
    %65 = tpu.matmul %62, %64, %cst_39 {dimension_numbers = #tpu.dot_dimension_numbers<[1], [0], [0], [1], [0, 0, 1, 1], [], []>} : vector<32x16xf32>, vector<16x128xf32>, vector<32x128xf32> -> vector<32x128xf32>
    %66 = arith.addf %58, %65 : vector<32x128xf32>
    %c0_40 = arith.constant 0 : index
    %c0_41 = arith.constant 0 : index
    %67 = vector.load %arg4[%c0_40, %c0_41] : memref<1x128xf32, #tpu.memory_space<vmem>>, vector<1x128xf32>
    %68 = vector.broadcast %67 : vector<1x128xf32> to vector<32x128xf32>
    %69 = arith.mulf %66, %68 : vector<32x128xf32>
    %c0_42 = arith.constant 0 : index
    %c0_43 = arith.constant 0 : index
    %70 = vector.load %arg5[%c0_42, %c0_43] : memref<1x128xf32, #tpu.memory_space<vmem>>, vector<1x128xf32>
    %71 = vector.broadcast %70 : vector<1x128xf32> to vector<32x128xf32>
    %72 = arith.addf %69, %71 : vector<32x128xf32>
    %cst_44 = arith.constant 0.000000e+00 : f32
    %73 = vector.broadcast %cst_44 : f32 to vector<32x128xf32>
    %74 = arith.maximumf %72, %73 : vector<32x128xf32>
    %c0_45 = arith.constant 0 : index
    %c0_46 = arith.constant 0 : index
    %c0_47 = arith.constant 0 : index
    %75 = vector.load %arg6[%c0_45, %c0_46, %c0_47] : memref<1x32x128xf32, #tpu.memory_space<vmem>>, vector<1x32x128xf32>
    %76 = vector.shape_cast %75 : vector<1x32x128xf32> to vector<32x128xf32>
    %77 = vector.shape_cast %74 : vector<32x128xf32> to vector<1x32x128xf32>
    tpu.vector_store %arg6[%c0_45, %c0_46, %c0_47], %77 {strides = array<i32>} : memref<1x32x128xf32, #tpu.memory_space<vmem>>, vector<1x32x128xf32>,
    return
  }
  func.func @transform_0(%arg0: i32, %arg1: i32) -> (i32, i32, i32) {
    %c0_i32 = arith.constant 0 : i32
    %c0_i32_0 = arith.constant 0 : i32
    %c0_i32_1 = arith.constant 0 : i32
    return %arg0, %c0_i32, %c0_i32_0 : i32, i32, i32
  }
  func.func @transform_1(%arg0: i32, %arg1: i32) -> (i32, i32, i32) {
    %c0_i32 = arith.constant 0 : i32
    %c0_i32_0 = arith.constant 0 : i32
    %c0_i32_1 = arith.constant 0 : i32
    %c0_i32_2 = arith.constant 0 : i32
    return %c0_i32, %c0_i32_0, %c0_i32_1 : i32, i32, i32
  }
  func.func @transform_2(%arg0: i32, %arg1: i32) -> (i32, i32) {
    %c0_i32 = arith.constant 0 : i32
    %c0_i32_0 = arith.constant 0 : i32
    %c0_i32_1 = arith.constant 0 : i32
    return %c0_i32, %c0_i32_0 : i32, i32
  }
  func.func @transform_3(%arg0: i32, %arg1: i32) -> (i32, i32) {
    %c0_i32 = arith.constant 0 : i32
    %c0_i32_0 = arith.constant 0 : i32
    %c0_i32_1 = arith.constant 0 : i32
    return %c0_i32, %c0_i32_0 : i32, i32
  }
  func.func @transform_4(%arg0: i32, %arg1: i32) -> (i32, i32, i32) {
    %c0_i32 = arith.constant 0 : i32
    %c0_i32_0 = arith.constant 0 : i32
    return %arg0, %arg1, %c0_i32 : i32, i32, i32
  }
}

</mosaic_0001>

<bundles_post_ra>
// kernel: tpu_custom_call.1
= control target key start
LH: loop header
LB: loop body
LE: loop exit
PB: predicated region body
PF: predicated region fallthrough
CT: control target
= control target key end

     0   :  { %9 = vsyncpa [#allocation3], 0  ;;  %s1322_s0 = inlined_call_operand.vmem [shape: f32[2,72,16], index: 0, kind: input, shape index: {}]   ;;  %s1323_s1 = inlined_call_operand.vmem [shape: f32[8,16,128], index: 1, kind: input, shape index: {}]   ;;  %s1324_s2 = inlined_call_operand.vmem [shape: f32[1,128], index: 2, kind: input, shape index: {}]   ;;  %s1325_s3 = inlined_call_operand.vmem [shape: f32[1,128], index: 3, kind: input, shape index: {}]   ;;  %s1326_s4 = inlined_call_operand.hbm [shape: f32[2,64,128], index: 4, kind: output, shape index: {}]  }
   0x1   :  { %11 = vsyncpa [#allocation3 + $0x1], 0  ;;  %s1070_s15 = smov 0   ;;  %s1072_s16 = smov 0  }
   0x2   :  { %s1074_s17 = smov 0   ;;  %s1076_s18 = smov 0  }
   0x3   :  { %s1078_s19 = smov 0   ;;  %s1080_s20 = smov 0  }
   0x4   :  { %s1082_s21 = smov 0   ;;  %s1084_s22 = smov 0  }
   0x5 LB: > { %s776_s23 = sadd.s32 4294967295, %s1041_s22   ;;  %s777_s24 = sadd.s32 4294967294, %s1041_s22   ;;  %s1041_s22 = sphi %s1084_s22, %s17_s22   ;;  %s1037_s21 = sphi %s1082_s21, %s1335_s21   ;;  %s1033_s20 = sphi %s1080_s20, %s1334_s20   ;;  %s1029_s19 = sphi %s1078_s19, %s1333_s19   ;;  %s1025_s18 = sphi %s1076_s18, %s1332_s18   ;;  %s1021_s17 = sphi %s1074_s17, %s1331_s17   ;;  %s1017_s16 = sphi %s1072_s16, %s1330_s16   ;;  %s1013_s15 = sphi %s1070_s15, %s1329_s15  }
   0x6   : > { %s26_s25 = sadd.s32 1, %s1033_s20  ;;  %s29_s26 = sadd.s32 1, %s1037_s21 }
   0x7   : > { %p27_p0 = scmp.ge.s32.totalorder %s26_s25, 2  ;;  %p137_p1 = scmp.ne.s32.totalorder %s1021_s17, %s1017_s16 }
   0x8   : > { %p138_p2 = scmp.eq.s32.totalorder %s776_s23, 3  ;;  %p143_p5 = scmp.ne.s32.totalorder %s1017_s16, %s1013_s15 }
   0x9   : > { %s1337_s25 = smov (%p27_p0, %s26_s25), 0  ;;  %s1339_s26 = smov (!%p27_p0, %s29_s26), %s1037_s21 }
   0xa   : > { %s123_s27 = ssub.s32 %s1033_s20, %s1337_s25  ;;  %p1121_p3 = por %p138_p2, %p137_p1 }
   0xb   : > { %p31_p4 = scmp.ge.s32.totalorder %s1339_s26, 2  ;;  %p144_p6 = scmp.eq.s32.totalorder %s777_s24, 3 }
   0xc   : > { %p780_p7 = scmp.ge.s32.totalorder %s1041_s22, 1  ;;  %p179_p9 = scmp.lt.s32.totalorder %s1041_s22, 5 }
   0xd   : > { %s1341_s26 = smov (%p31_p4, %s1339_s26), 0  ;;  %p1130_p8 = por %p144_p6, %p143_p5 }
   0xe   : > { %s122_s30 = ssub.s32 %s1037_s21, %s1341_s26  ;;  %s127_s5 = sadd.s32 1, %s1021_s17 }
   0xf   : > { %s124_s6 = sor.u32 %s123_s27, %s122_s30  ;;  %p180_p10 = pnand %p780_p7, %p179_p9 }
  0x10   : > { %p125_p11 = scmp.eq.s32.totalorder %s124_s6, 0  ;;  %p205_p12 = scmp.lt.s32.totalorder (!%p180_p10), %s1029_s19, 1 }
  0x11   : > { %183 = sbr.rel (%p180_p10) target bundleno = 233 (0xe9), region = 36  ;;  %s783_s9 = sshll.u32 (!%p180_p10), %s1025_s18, 5 }
  0x12   : > { %s1139_s7 = scalar_select %p125_p11, %s1021_s17, %s127_s5  }
  0x13   : > { %s202_s11 = sand.u32 (!%p180_p10), 1, %s1017_s16   ;;  %s866_s24 = sshll.u32 (!%p180_p10), %s1025_s18, 2 }
  0x14   : > { %s781_s14 = sshll.u32 (!%p180_p10), %s202_s11, 5  ;;  %s867_s27 = sshll.u32 (!%p180_p10), %s1029_s19, 3 }
  0x15   : > { %s1270_s23 = scalar_lea.vmem (!%p180_p10), [#allocation2], %s781_s14 }
  0x16   : > { %v790_v0 = vld [vmem:[%s1323_s1 + $0x18] sm:$0xff]  ;;  %v805_v1 = vld [vmem:[%s1323_s1 + $0x28] sm:$0xff]  ;;  %v789_v2 = vld [vmem:[%s1323_s1 + $0x10] sm:$0xff]  ;;  %s206_s6 = scalar_select %p205_p12, %s1029_s19, 1  ;;  %vm228_vm0 = vcmask 130048  }
  0x17   : > { %255 = vmatpush.msra.mxu0 %v790_v0  ;;  %346 = vmatpush.msra.mxu2 %v805_v1  ;;  %v218_v3 = vld [vmem:[%s1323_s1 + $0x8] sm:$0xff]  ;;  %v804_v4 = vld [vmem:[%s1323_s1 + $0x20] sm:$0xff]  ;;  %v816_v5 = vld [vmem:[%s1323_s1 + $0x38] sm:$0xff] }
  0x18   : > { %296 = vmatpush.msra.mxu1 %v218_v3  ;;  %400 = vmatpush.msra.mxu3 %v816_v5  ;;  %v849_v6 = vld [vmem:[%s1323_s1 + $0x68] sm:$0xff]  ;;  %v217_v7 = vld [vmem:[%s1323_s1] sm:$0xff]  ;;  %v815_v8 = vld [vmem:[%s1323_s1 + $0x30] sm:$0xff]  ;;  %s871_s8 = smul.u32 72, %s206_s6  ;;  %s671_s6 = sadd.s32 %s867_s27, %s866_s24 }
  0x19   : > { %256 = vmatpush.msra.mxu0 %v789_v2  ;;  %347 = vmatpush.msra.mxu2 %v804_v4  ;;  %v827_v9 = vld [vmem:[%s1323_s1 + $0x48] sm:$0xff]  ;;  %v860_v10 = vld [vmem:[%s1323_s1 + $0x78] sm:$0xff]  ;;  %v848_v12 = vld [vmem:[%s1323_s1 + $0x60] sm:$0xff]  ;;  %s868_s30 = sshll.u32 %s671_s6, 3  ;;  %s967_s27 = scalar_lea.hbm %s1326_s4, 128 }
  0x1a   : > { %v838_v11 = vld [vmem:[%s1323_s1 + $0x58] sm:$0xff]  ;;  %297 = vmatpush.msra.mxu1 %v217_v7  ;;  %v826_v13 = vld [vmem:[%s1323_s1 + $0x40] sm:$0xff]  ;;  %v859_v14 = vld [vmem:[%s1323_s1 + $0x70] sm:$0xff]  ;;  %401 = vmatpush.msra.mxu3 %v815_v8  ;;  %s209_s5 = scalar_lea.vmem %s1322_s0, %s871_s8 }
  0x1b   : > { %562 = vmatpush.msrb.mxu2 %v849_v6  ;;  %454 = vmatpush.msrb.mxu0 %v827_v9  ;;  %v837_v15 = vld [vmem:[%s1323_s1 + $0x50] sm:$0xff]  ;;  %s1195_s10 = scalar_lea.vmem %s209_s5, %s783_s9  ;;  %s673_s5 = scalar_lea.hbm %s1326_s4, %s868_s30 }
  0x1c   : > { %616 = vmatpush.msrb.mxu3 %v860_v10  ;;  %508 = vmatpush.msrb.mxu1 %v838_v11  ;;  %v785_v16 = vld [vmem:[%s1195_s10 + $0x1] sm:$0xff]  ;;  %v786_v20 = vld [vmem:[%s1195_s10 + $0x9] sm:$0xff]  ;;  %v787_v24 = vld [vmem:[%s1195_s10 + $0x11] sm:$0xff]  ;;  %s676_s8 = sshll.u32 %s673_s5, 4  ;;  %s660_s9 = scalar_lea.sflag [#allocation3], %s202_s11  ;;  %s677_s8 = int_to_ptr.hbm [resolvable:$true] %s676_s8 }
  0x1d   : > { %563 = vmatpush.msrb.mxu2 %v848_v12  ;;  %455 = vmatpush.msrb.mxu0 %v826_v13  ;;  %v800_v17 = vld [vmem:[%s1195_s10 + $0x2] sm:$0xff]  ;;  %v801_v21 = vld [vmem:[%s1195_s10 + $0xa] sm:$0xff]  ;;  %v802_v25 = vld [vmem:[%s1195_s10 + $0x12] sm:$0xff]  ;;  %s961_s12 = sshra.s32 %s677_s8, 4  ;;  %s962_s12 = int_to_ptr.hbm [resolvable:$true] %s961_s12 }
  0x1e   : > { %v213_v18 = vld [vmem:[%s1195_s10] sm:$0xff]  ;;  %617 = vmatpush.msrb.mxu3 %v859_v14  ;;  %509 = vmatpush.msrb.mxu1 %v837_v15  ;;  %v214_v22 = vld [vmem:[%s1195_s10 + $0x8] sm:$0xff]  ;;  %v215_v26 = vld [vmem:[%s1195_s10 + $0x10] sm:$0xff]  ;;  %s963_s13 = scalar_lea.hbm %s962_s12, 32  ;;  %p968_p2 = scmp.lt.s32.totalorder %s962_s12, %s1326_s4 }
  0x1f   : > { %791 = vmatmul.msk.f32.vlgmr.msra.gmra.mxu0 %vm228_vm0, %v785_v16  ;;  %806 = vmatmul.msk.f32.vlgmr.msra.gmra.mxu2 %vm228_vm0, %v800_v17  ;;  %v811_v19 = vld [vmem:[%s1195_s10 + $0x3] sm:$0xff]  ;;  %v812_v23 = vld [vmem:[%s1195_s10 + $0xb] sm:$0xff]  ;;  %v813_v27 = vld [vmem:[%s1195_s10 + $0x13] sm:$0xff]  ;;  %p964_p13 = scmp.ne.s32.totalorder %s962_s12, %s963_s13  ;;  %p969_p4 = scmp.lt.s32.totalorder %s967_s27, %s963_s13 }
  0x20   : > { %795 = vmatmul.msk.f32.vlgmr.msra.gmra.mxu1 %vm228_vm0, %v213_v18  ;;  %817 = vmatmul.msk.f32.vlgmr.msra.gmra.mxu3 %vm228_vm0, %v811_v19  ;;  %v788_v28 = vld [vmem:[%s1195_s10 + $0x19] sm:$0xff]  ;;  %v822_v32 = vld [vmem:[%s1195_s10 + $0x4] sm:$0xff]  ;;  %v823_v36 = vld [vmem:[%s1195_s10 + $0xc] sm:$0xff] }
  0x21   : > { %v803_v29 = vld [vmem:[%s1195_s10 + $0x1a] sm:$0xff]  ;;  %v844_v33 = vld [vmem:[%s1195_s10 + $0x6] sm:$0xff]  ;;  %v845_v37 = vld [vmem:[%s1195_s10 + $0xe] sm:$0xff]  ;;  %p965_p0 = pnand %p964_p13, %p1121_p3  ;;  %p970_p5 = por %p969_p4, %p968_p2 }
  0x22   : > { %v216_v30 = vld [vmem:[%s1195_s10 + $0x18] sm:$0xff]  ;;  %v833_v34 = vld [vmem:[%s1195_s10 + $0x5] sm:$0xff]  ;;  %v834_v38 = vld [vmem:[%s1195_s10 + $0xd] sm:$0xff] }
  0x23   : > { %v814_v31 = vld [vmem:[%s1195_s10 + $0x1b] sm:$0xff]  ;;  %v855_v35 = vld [vmem:[%s1195_s10 + $0x7] sm:$0xff]  ;;  %v856_v39 = vld [vmem:[%s1195_s10 + $0xf] sm:$0xff]  ;;  %p966_p1 = pneg %p965_p0 }
  0x24   : > { %v824_v40 = vld [vmem:[%s1195_s10 + $0x14] sm:$0xff]  ;;  %v825_v44 = vld [vmem:[%s1195_s10 + $0x1c] sm:$0xff] }
  0x25   : > { %v846_v41 = vld [vmem:[%s1195_s10 + $0x16] sm:$0xff]  ;;  %v847_v45 = vld [vmem:[%s1195_s10 + $0x1e] sm:$0xff]  ;;  %p971_p6 = pnand %p970_p5, %p966_p1 }
  0x26   : > { %v835_v42 = vld [vmem:[%s1195_s10 + $0x15] sm:$0xff]  ;;  %v836_v46 = vld [vmem:[%s1195_s10 + $0x1d] sm:$0xff] }
  0x27   : > { %792 = vmatmul.msk.f32.gmra.mxu0 %vm228_vm0, %v786_v20  ;;  %807 = vmatmul.msk.f32.gmra.mxu2 %vm228_vm0, %v801_v21  ;;  %v857_v43 = vld [vmem:[%s1195_s10 + $0x17] sm:$0xff]  ;;  %v858_v47 = vld [vmem:[%s1195_s10 + $0x1f] sm:$0xff]  ;;  %s674_s10 = sshll.u32 %s1270_s23, 4  ;;  %s675_s10 = int_to_ptr.vmem [resolvable:$true] %s674_s10 }
  0x28   : > { %796 = vmatmul.msk.f32.gmra.mxu1 %vm228_vm0, %v214_v22  ;;  %818 = vmatmul.msk.f32.gmra.mxu3 %vm228_vm0, %v812_v23  ;;  %v945_v13 = vld [vmem:[%s1324_s2] ss:$0 sm:$0xff] }
  0x29   : > { %v946_v18 = vld [vmem:[%s1325_s3] ss:$0 sm:$0xff] }
  0x2f   : > { %793 = vmatmul.msk.f32.gmra.mxu0 %vm228_vm0, %v787_v24  ;;  %808 = vmatmul.msk.f32.gmra.mxu2 %vm228_vm0, %v802_v25 }
  0x30   : > { %797 = vmatmul.msk.f32.gmra.mxu1 %vm228_vm0, %v215_v26  ;;  %819 = vmatmul.msk.f32.gmra.mxu3 %vm228_vm0, %v813_v27 }
  0x37   : > { %794 = vmatmul.msk.f32.gmra.mxu0 %vm228_vm0, %v788_v28  ;;  %809 = vmatmul.msk.f32.gmra.mxu2 %vm228_vm0, %v803_v29 }
  0x38   : > { %798 = vmatmul.msk.f32.gmra.mxu1 %vm228_vm0, %v216_v30  ;;  %820 = vmatmul.msk.f32.gmra.mxu3 %vm228_vm0, %v814_v31 }
  0x3f   : > { %828 = vmatmul.msk.f32.vlgmr.msrb.gmra.mxu0 %vm228_vm0, %v822_v32  ;;  %850 = vmatmul.msk.f32.vlgmr.msrb.gmra.mxu2 %vm228_vm0, %v844_v33 }
  0x40   : > { %839 = vmatmul.msk.f32.vlgmr.msrb.gmra.mxu1 %vm228_vm0, %v833_v34  ;;  %861 = vmatmul.msk.f32.vlgmr.msrb.gmra.mxu3 %vm228_vm0, %v855_v35 }
  0x47   : > { %829 = vmatmul.msk.f32.gmra.mxu0 %vm228_vm0, %v823_v36  ;;  %851 = vmatmul.msk.f32.gmra.mxu2 %vm228_vm0, %v845_v37 }
  0x48   : > { %840 = vmatmul.msk.f32.gmra.mxu1 %vm228_vm0, %v834_v38  ;;  %862 = vmatmul.msk.f32.gmra.mxu3 %vm228_vm0, %v856_v39 }
  0x4f   : > { %830 = vmatmul.msk.f32.gmra.mxu0 %vm228_vm0, %v824_v40  ;;  %852 = vmatmul.msk.f32.gmra.mxu2 %vm228_vm0, %v846_v41 }
  0x50   : > { %841 = vmatmul.msk.f32.gmra.mxu1 %vm228_vm0, %v835_v42  ;;  %863 = vmatmul.msk.f32.gmra.mxu3 %vm228_vm0, %v857_v43 }
  0x57   : > { %831 = vmatmul.msk.f32.gmra.mxu0 %vm228_vm0, %v825_v44  ;;  %853 = vmatmul.msk.f32.gmra.mxu2 %vm228_vm0, %v847_v45 }
  0x58   : > { %842 = vmatmul.msk.f32.gmra.mxu1 %vm228_vm0, %v836_v46  ;;  %864 = vmatmul.msk.f32.gmra.mxu3 %vm228_vm0, %v858_v47 }
  0x9c   : > { %v258_v48 = vpop.f32.mrf.mxu0 }
  0x9d   : > { %v299_v49 = vpop.f32.mrf.mxu1 }
  0x9e   : > { %v300_v61 = vadd.f32 %v299_v49, %v258_v48 }
  0xa2   : > { %v349_v50 = vpop.f32.mrf.mxu2 }
  0xa3   : > { %v403_v51 = vpop.f32.mrf.mxu3  ;;  %v361_v63 = vadd.f32 %v349_v50, %v300_v61 }
  0xa4   : > { %v261_v52 = vpop.f32.mrf.mxu0 }
  0xa5   : > { %v302_v53 = vpop.f32.mrf.mxu1  ;;  %v415_v1 = vadd.f32 %v403_v51, %v361_v63 }
  0xa6   : > { %v303_v4 = vadd.f32 %v302_v53, %v261_v52 }
  0xaa   : > { %v352_v54 = vpop.f32.mrf.mxu2 }
  0xab   : > { %v406_v55 = vpop.f32.mrf.mxu3  ;;  %v362_v7 = vadd.f32 %v352_v54, %v303_v4 }
  0xac   : > { %v264_v56 = vpop.f32.mrf.mxu0 }
  0xad   : > { %v305_v57 = vpop.f32.mrf.mxu1  ;;  %v416_v10 = vadd.f32 %v406_v55, %v362_v7 }
  0xae   : > { %v306_v15 = vadd.f32 %v305_v57, %v264_v56 }
  0xb2   : > { %v355_v58 = vpop.f32.mrf.mxu2 }
  0xb3   : > { %v409_v59 = vpop.f32.mrf.mxu3  ;;  %v363_v20 = vadd.f32 %v355_v58, %v306_v15 }
  0xb4   : > { %v267_v60 = vpop.f32.mrf.mxu0 }
  0xb5   : > { %v308_v62 = vpop.f32.mrf.mxu1  ;;  %v417_v25 = vadd.f32 %v409_v59, %v363_v20 }
  0xb6   : > { %v309_v30 = vadd.f32 %v308_v62, %v267_v60 }
  0xba   : > { %v358_v0 = vpop.f32.mrf.mxu2 }
  0xbb   : > { %v412_v2 = vpop.f32.mrf.mxu3  ;;  %v364_v34 = vadd.f32 %v358_v0, %v309_v30 }
  0xbc   : > { %v457_v3 = vpop.f32.mrf.mxu0 }
  0xbd   : > { %v469_v5 = vadd.f32 %v457_v3, %v415_v1  ;;  %v511_v6 = vpop.f32.mrf.mxu1  ;;  %v418_v39 = vadd.f32 %v412_v2, %v364_v34 }
  0xbf   : > { %v523_v8 = vadd.f32 %v511_v6, %v469_v5 }
  0xc2   : > { %v565_v9 = vpop.f32.mrf.mxu2 }
  0xc3   : > { %v577_v11 = vadd.f32 %v565_v9, %v523_v8  ;;  %v619_v12 = vpop.f32.mrf.mxu3 }
  0xc4   : > { %v460_v14 = vpop.f32.mrf.mxu0 }
  0xc5   : > { %v470_v16 = vadd.f32 %v460_v14, %v416_v10  ;;  %v631_v17 = vadd.f32 %v619_v12, %v577_v11  ;;  %v514_v19 = vpop.f32.mrf.mxu1 }
  0xc7   : > { %v639_v21 = vmul.f32 %v945_v13, %v631_v17  ;;  %v524_v23 = vadd.f32 %v514_v19, %v470_v16 }
  0xc9   : > { %v647_v22 = vadd.f32 %v946_v18, %v639_v21 }
  0xca   : > { %v568_v24 = vpop.f32.mrf.mxu2 }
  0xcb   : > { %v651_v26 = vmax.f32 %v647_v22, 0.0  ;;  %v578_v27 = vadd.f32 %v568_v24, %v524_v23  ;;  %v622_v28 = vpop.f32.mrf.mxu3 }
  0xcc   : > { %v463_v29 = vpop.f32.mrf.mxu0 }
  0xcd   : > { %655 = vst [vmem:[%s1270_s23] sm:$0xff] %v651_v26  ;;  %v471_v31 = vadd.f32 %v463_v29, %v417_v25  ;;  %v632_v32 = vadd.f32 %v622_v28, %v578_v27  ;;  %v517_v33 = vpop.f32.mrf.mxu1 }
  0xcf   : > { %v640_v35 = vmul.f32 %v945_v13, %v632_v32  ;;  %v525_v37 = vadd.f32 %v517_v33, %v471_v31 }
  0xd1   : > { %v648_v36 = vadd.f32 %v946_v18, %v640_v35 }
  0xd2   : > { %v571_v38 = vpop.f32.mrf.mxu2 }
  0xd3   : > { %v652_v40 = vmax.f32 %v648_v36, 0.0  ;;  %v579_v41 = vadd.f32 %v571_v38, %v525_v37  ;;  %v625_v42 = vpop.f32.mrf.mxu3 }
  0xd4   : > { %v466_v43 = vpop.f32.mrf.mxu0 }
  0xd5   : > { %656 = vst [vmem:[%s1270_s23 + $0x8] sm:$0xff] %v652_v40  ;;  %v472_v44 = vadd.f32 %v466_v43, %v418_v39  ;;  %v633_v45 = vadd.f32 %v625_v42, %v579_v41  ;;  %v520_v46 = vpop.f32.mrf.mxu1 }
  0xd7   : > { %v641_v47 = vmul.f32 %v945_v13, %v633_v45  ;;  %v526_v49 = vadd.f32 %v520_v46, %v472_v44 }
  0xd9   : > { %v649_v48 = vadd.f32 %v946_v18, %v641_v47 }
  0xda   : > { %v574_v50 = vpop.f32.mrf.mxu2 }
  0xdb   : > { %v653_v51 = vmax.f32 %v649_v48, 0.0  ;;  %v580_v52 = vadd.f32 %v574_v50, %v526_v49  ;;  %v628_v53 = vpop.f32.mrf.mxu3 }
  0xdd   : > { %657 = vst [vmem:[%s1270_s23 + $0x10] sm:$0xff] %v653_v51  ;;  %v634_v54 = vadd.f32 %v628_v53, %v580_v52 }
  0xdf   : > { %v642_v55 = vmul.f32 %v945_v13, %v634_v54 }
  0xe1   : > { %v650_v56 = vadd.f32 %v946_v18, %v642_v55 }
  0xe3   : > { %v654_v57 = vmax.f32 %v650_v56, 0.0 }
  0xe5   : > { %658 = vst [vmem:[%s1270_s23 + $0x18] sm:$0xff] %v654_v57 }
  0xe6   : > { %974 = shalt.err (!%p971_p6)
}
  0xe7   : > { %s1043_s11 = smov 128   ;;  %s1044_s23 = smov 8  }
  0xe8   : > { %872 = dma.vmem_to_hbm [thread:$0]  (%p1121_p3), %s675_s10, 512, %s677_s8, %s660_s9, %s1043_s11, %s1043_s11, %s1044_s23  }
  0xe9 PF: > { %p878_p7 = scmp.ge.s32.totalorder %s1041_s22, 2  ;;  %s691_s18 = sand.u32 1, %s1013_s15  }
  0xea   : > { %s692_s19 = scalar_lea.sflag [#allocation3], %s691_s18 }
  0xeb   : > { %p875_p9 = pnand %p878_p7, %p1130_p8 }
  0xed   : > { %p876_p10 = pneg %p875_p9 }
  0xef   : > { %1008 = dma.done.wait (%p876_p10), %s692_s19, 512  }
  0xf0   : > { %1010 = vsyncadd (%p876_p10), %s692_s19, 4294966784  ;;  %s17_s22 = sadd.s32 1, %s1041_s22   ;;  %s1329_s15 = smov %s1017_s16 }
  0xf1   : > { %p14_p11 = scmp.ge.s32.totalorder %s17_s22, 6   ;;  %s1330_s16 = smov %s1021_s17 }
  0xf2   : > { %s1331_s17 = smov %s1139_s7  ;;  %s1332_s18 = smov %s1033_s20 }
  0xf3   : > { %s1333_s19 = smov %s1037_s21  ;;  %s1334_s20 = smov %s1337_s25 }
  0xf4   : > { %s1335_s21 = smov %s1341_s26  ;;  %16 = sbr.rel (!%p14_p11) target bundleno = 5 (0x5), region = 86 }
  0xf9   :  { %698 = vsyncpa [#allocation3], 1 }
  0xfa   :  { %700 = vsyncpa [#allocation3 + $0x1], 1 }

</bundles_post_ra>
